<compile_context>
chip_gen: v6e
topology: v6e:2x2x1
jax: 0.10.0
libtpu: 0.0.40
codegen_flags: <defaults>
</compile_context>

<pallas_src>
import jax
import jax.numpy as jnp
from jax import lax
from jax.experimental import pallas as pl
from jax.experimental.pallas import tpu as pltpu  # noqa: F401  (TPU backend)

BN_EPS = 1e-5
LANE = 128          # lane padding for the hidden dim (native MXU tile on v5e)
BF16_SUBLANES = 16  # bf16 sublane pack factor: keep batch a multiple of this


def _round_up(v, m):
    return ((v + m - 1) // m) * m


def simple_model_kernel(x_ref, w1_ref, gamma_ref, beta_ref, w2_ref, b2_ref, o_ref):
    n = x_ref.shape[0]  # static

    # Layer 1 on the MXU: bf16 operands, f32 accumulation.  The Linear bias is
    # omitted on purpose: train-mode BatchNorm's mean subtraction cancels any
    # per-feature constant exactly (train-mode-only scope constraint).
    h = jnp.dot(x_ref[...].astype(jnp.bfloat16), w1_ref[...],
                preferred_element_type=jnp.float32)            # (N, Hp) f32

    # BatchNorm1d (training mode, biased variance) — single-pass statistics:
    # sum(h) and sum(h*h), var = E[h^2] - mean^2, clamped >= 0 against
    # catastrophic cancellation (accumulation stays f32).  Affine is folded
    # into one per-feature scale/shift, so only one mul + one add over (N, Hp).
    inv_n = jnp.float32(1.0 / n)
    mean = jnp.sum(h, axis=0, keepdims=True) * inv_n           # (1, Hp)
    ex2 = jnp.sum(h * h, axis=0, keepdims=True) * inv_n        # (1, Hp)
    var = jnp.maximum(ex2 - mean * mean, 0.0)
    scale = gamma_ref[...] * lax.rsqrt(var + BN_EPS)           # (1, Hp)
    shift = beta_ref[...] - mean * scale                       # (1, Hp)

    # ReLU, then Layer 2 on the MXU (bf16 operands, f32 accumulation).  The
    # output tile is written unpadded; a masked vst on this tiny tile is free.
    hr = jnp.maximum(h * scale + shift, 0.0).astype(jnp.bfloat16)
    o_ref[...] = jnp.dot(hr, w2_ref[...],
                         preferred_element_type=jnp.float32) + b2_ref[...]


def simple_model_forward(x, packed_params):
    """x: (N, input_size) f32.  Returns (N, output_size) f32.

    Whole (padded-hidden) problem fits in one VMEM tile; no grid needed.
    """
    w1, gamma, beta, w2, b2 = packed_params
    n = x.shape[0]
    out_size = w2.shape[1]

    full = lambda a: pl.BlockSpec(a.shape, lambda: (0,) * a.ndim)

    return pl.pallas_call(
        simple_model_kernel,
        out_shape=jax.ShapeDtypeStruct((n, out_size), jnp.float32),
        in_specs=[full(x), full(w1), full(gamma), full(beta), full(w2), full(b2)],
        out_specs=pl.BlockSpec((n, out_size), lambda: (0, 0)),
    )(x, w1, gamma, beta, w2, b2)


def init_params(key, input_size, hidden_size, output_size):
    """f32, unpadded, PyTorch-default-style init (uniform +/- 1/sqrt(fan_in)).
    Weights stored transposed: (in, out).  b1 is generated only so the f32
    reference can include it and demonstrate that train-mode BN cancels it."""
    k1, k2, k3, k4 = jax.random.split(key, 4)
    bound1 = 1.0 / jnp.sqrt(jnp.float32(input_size))
    bound2 = 1.0 / jnp.sqrt(jnp.float32(hidden_size))
    w1 = jax.random.uniform(k1, (input_size, hidden_size), jnp.float32, -bound1, bound1)
    b1 = jax.random.uniform(k2, (1, hidden_size), jnp.float32, -bound1, bound1)
    w2 = jax.random.uniform(k3, (hidden_size, output_size), jnp.float32, -bound2, bound2)
    b2 = jax.random.uniform(k4, (1, output_size), jnp.float32, -bound2, bound2)
    gamma = jnp.ones((1, hidden_size), jnp.float32)
    beta = jnp.zeros((1, hidden_size), jnp.float32)
    return w1, b1, gamma, beta, w2, b2


def pack_params(w1, gamma, beta, w2, b2):
    """One-time packing for the kernel: pad the HIDDEN dim up to a multiple of
    128 lanes and cast matmul weights to bf16.  The output dim is left
    unpadded (the kernel writes it directly; no external slice).  Padded w1
    columns / w2 rows are zero, padded gamma=1, beta=0, so padded hidden
    features are exactly zero through BN/ReLU and contribute nothing.
    WARNING: that zero-propagation is what keeps padded columns inert — any
    nonzero leakage into the padded w1 columns would produce garbage."""
    input_size, hidden = w1.shape
    out = w2.shape[1]
    hp = _round_up(hidden, LANE)
    w1p = jnp.zeros((input_size, hp), jnp.bfloat16).at[:, :hidden].set(w1.astype(jnp.bfloat16))
    gammap = jnp.ones((1, hp), jnp.float32).at[:, :hidden].set(gamma)
    betap = jnp.zeros((1, hp), jnp.float32).at[:, :hidden].set(beta)
    w2p = jnp.zeros((hp, out), jnp.bfloat16).at[:hidden, :].set(w2.astype(jnp.bfloat16))
    b2p = b2.astype(jnp.float32)
    return w1p, gammap, betap, w2p, b2p


if __name__ == "__main__":
    # Batch chosen as a multiple of 16 so bf16 MXU operands fill packed
    # (16,128) vregs (no sublane masking on the MXU feed path).
    batch = 16
    input_size = 16
    hidden_size = 32
    output_size = 8
    assert batch % BF16_SUBLANES == 0, "pick batch as a multiple of 16 for bf16 packing"

    key = jax.random.PRNGKey(0)
    kx, kp = jax.random.split(key)
    x = jax.random.normal(kx, (batch, input_size), dtype=jnp.float32)
    w1, b1, gamma, beta, w2, b2 = init_params(kp, input_size, hidden_size, output_size)
    packed = pack_params(w1, gamma, beta, w2, b2)

    out = simple_model_forward(x, packed)
    jax.block_until_ready(out)

    # Pure-JAX f32 reference with full PyTorch train-mode semantics (b1
    # INCLUDED): the bias-free bf16-MXU kernel must agree because train-mode
    # BN cancels b1.  Tolerance sized for bf16 matmul inputs (f32 accumulation).
    h_ref = x @ w1 + b1
    m = h_ref.mean(axis=0, keepdims=True)
    v = ((h_ref - m) ** 2).mean(axis=0, keepdims=True)
    h_ref = jnp.maximum((h_ref - m) / jnp.sqrt(v + BN_EPS) * gamma + beta, 0.0)
    ref = h_ref @ w2 + b2

    assert out.shape == ref.shape, (out.shape, ref.shape)
    assert jnp.allclose(out, ref, atol=3e-2, rtol=3e-2), "mismatch vs reference"

    print("KERNEL_OK")
</pallas_src>

<mosaic_0001>
module attributes {stable_mosaic.version = 11 : i64} {
  func.func @simple_model_kernel(%arg0: memref<16x16xf32, #tpu.memory_space<vmem>>, %arg1: memref<16x128xbf16, #tpu.memory_space<vmem>>, %arg2: memref<1x128xf32, #tpu.memory_space<vmem>>, %arg3: memref<1x128xf32, #tpu.memory_space<vmem>>, %arg4: memref<128x8xbf16, #tpu.memory_space<vmem>>, %arg5: memref<1x8xf32, #tpu.memory_space<vmem>>, %arg6: memref<16x8xf32, #tpu.memory_space<vmem>>) attributes {dimension_semantics = [], scalar_prefetch = 0 : i64, scratch_operands = 0 : i64, tpu.core_type = #tpu.core_type<tc>} {
    %c0 = arith.constant 0 : index
    %c0_0 = arith.constant 0 : index
    %0 = vector.load %arg0[%c0, %c0_0] : memref<16x16xf32, #tpu.memory_space<vmem>>, vector<16x16xf32>
    %1 = arith.truncf %0 : vector<16x16xf32> to vector<16x16xbf16>
    %c0_1 = arith.constant 0 : index
    %c0_2 = arith.constant 0 : index
    %2 = vector.load %arg1[%c0_1, %c0_2] : memref<16x128xbf16, #tpu.memory_space<vmem>>, vector<16x128xbf16>
    %cst = arith.constant dense<0.000000e+00> : vector<16x128xf32>
    %3 = tpu.matmul %1, %2, %cst {dimension_numbers = #tpu.dot_dimension_numbers<[1], [0], [0], [1], [0, 0, 1, 1], [], []>} : vector<16x16xbf16>, vector<16x128xbf16>, vector<16x128xf32> -> vector<16x128xf32>
    %cst_3 = arith.constant dense<0.000000e+00> : vector<128xf32>
    %4 = vector.multi_reduction <add>, %3, %cst_3 [0] : vector<16x128xf32> to vector<128xf32>
    %5 = vector.shape_cast %4 : vector<128xf32> to vector<1x128xf32>
    %cst_4 = arith.constant 6.250000e-02 : f32
    %6 = vector.broadcast %cst_4 : f32 to vector<1x128xf32>
    %7 = arith.mulf %5, %6 : vector<1x128xf32>
    %8 = arith.mulf %3, %3 : vector<16x128xf32>
    %cst_5 = arith.constant dense<0.000000e+00> : vector<128xf32>
    %9 = vector.multi_reduction <add>, %8, %cst_5 [0] : vector<16x128xf32> to vector<128xf32>
    %10 = vector.shape_cast %9 : vector<128xf32> to vector<1x128xf32>
    %cst_6 = arith.constant 6.250000e-02 : f32
    %11 = vector.broadcast %cst_6 : f32 to vector<1x128xf32>
    %12 = arith.mulf %10, %11 : vector<1x128xf32>
    %13 = arith.mulf %7, %7 : vector<1x128xf32>
    %14 = arith.subf %12, %13 : vector<1x128xf32>
    %cst_7 = arith.constant 0.000000e+00 : f32
    %15 = vector.broadcast %cst_7 : f32 to vector<1x128xf32>
    %16 = arith.maximumf %14, %15 : vector<1x128xf32>
    %c0_8 = arith.constant 0 : index
    %c0_9 = arith.constant 0 : index
    %17 = vector.load %arg2[%c0_8, %c0_9] : memref<1x128xf32, #tpu.memory_space<vmem>>, vector<1x128xf32>
    %cst_10 = arith.constant 9.99999974E-6 : f32
    %18 = vector.broadcast %cst_10 : f32 to vector<1x128xf32>
    %19 = arith.addf %16, %18 : vector<1x128xf32>
    %20 = math.rsqrt %19 : vector<1x128xf32>
    %21 = arith.mulf %17, %20 : vector<1x128xf32>
    %c0_11 = arith.constant 0 : index
    %c0_12 = arith.constant 0 : index
    %22 = vector.load %arg3[%c0_11, %c0_12] : memref<1x128xf32, #tpu.memory_space<vmem>>, vector<1x128xf32>
    %23 = arith.mulf %7, %21 : vector<1x128xf32>
    %24 = arith.subf %22, %23 : vector<1x128xf32>
    %25 = vector.broadcast %21 : vector<1x128xf32> to vector<16x128xf32>
    %26 = arith.mulf %3, %25 : vector<16x128xf32>
    %27 = vector.broadcast %24 : vector<1x128xf32> to vector<16x128xf32>
    %28 = arith.addf %26, %27 : vector<16x128xf32>
    %cst_13 = arith.constant 0.000000e+00 : f32
    %29 = vector.broadcast %cst_13 : f32 to vector<16x128xf32>
    %30 = arith.maximumf %28, %29 : vector<16x128xf32>
    %31 = arith.truncf %30 : vector<16x128xf32> to vector<16x128xbf16>
    %c0_14 = arith.constant 0 : index
    %c0_15 = arith.constant 0 : index
    %32 = vector.load %arg4[%c0_14, %c0_15] : memref<128x8xbf16, #tpu.memory_space<vmem>>, vector<128x8xbf16>
    %cst_16 = arith.constant dense<0.000000e+00> : vector<16x8xf32>
    %33 = tpu.matmul %31, %32, %cst_16 {dimension_numbers = #tpu.dot_dimension_numbers<[1], [0], [0], [1], [0, 0, 1, 1], [], []>} : vector<16x128xbf16>, vector<128x8xbf16>, vector<16x8xf32> -> vector<16x8xf32>
    %c0_17 = arith.constant 0 : index
    %c0_18 = arith.constant 0 : index
    %34 = vector.load %arg5[%c0_17, %c0_18] : memref<1x8xf32, #tpu.memory_space<vmem>>, vector<1x8xf32>
    %35 = vector.broadcast %34 : vector<1x8xf32> to vector<16x8xf32>
    %36 = arith.addf %33, %35 : vector<16x8xf32>
    %c0_19 = arith.constant 0 : index
    %c0_20 = arith.constant 0 : index
    %37 = vector.load %arg6[%c0_19, %c0_20] : memref<16x8xf32, #tpu.memory_space<vmem>>, vector<16x8xf32>
    tpu.vector_store %arg6[%c0_19, %c0_20], %36 {strides = array<i32>} : memref<16x8xf32, #tpu.memory_space<vmem>>, vector<16x8xf32>,
    return
  }
}

</mosaic_0001>

<bundles_post_ra>
// kernel: tpu_custom_call.1
= control target key start
LH: loop header
LB: loop body
LE: loop exit
PB: predicated region body
PF: predicated region fallthrough
CT: control target
= control target key end

     0   :  { %v307_v0 = vmov 0.0   ;;  %vm308_vm0 = vmmov 0   ;;  %vm35_vm1 = vcmask 130048   ;;  %v109_v39 = vlaneseq  ;;  %s392_s1 = inlined_call_operand.vmem [shape: bf16[16,128], index: 1, kind: input, shape index: {}]   ;;  %s393_s0 = inlined_call_operand.vmem [shape: f32[16,16], index: 0, kind: input, shape index: {}]   ;;  %s394_s4 = inlined_call_operand.vmem [shape: bf16[128,8], index: 4, kind: input, shape index: {}]   ;;  %s395_s2 = inlined_call_operand.vmem [shape: f32[1,128], index: 2, kind: input, shape index: {}]   ;;  %s396_s3 = inlined_call_operand.vmem [shape: f32[1,128], index: 3, kind: input, shape index: {}]   ;;  %s397_s5 = inlined_call_operand.vmem [shape: f32[1,8], index: 5, kind: input, shape index: {}]   ;;  %s398_s6 = inlined_call_operand.vmem [shape: f32[16,8], index: 6, kind: output, shape index: {}]  }
   0x1   :  { %268 = vmatprep.subr.bf16.mxu0 %v307_v0  ;;  %v296_v1 = vld [vmem:[%s392_s1] sm:$0xff]   ;;  %270 = vmatprep.mubr.msk.bf16.mxu0 %vm308_vm0, %v307_v0  ;;  %v25_v3 = vld [vmem:[%s393_s0 + $0x8] sm:$0xff]  ;;  %v297_v5 = vld [vmem:[%s394_s4 + $0x38] sm:$0xff]   ;;  %vm239_vm2 = vcmask 64512  }
   0x2   :  { %v24_v2 = vld [vmem:[%s393_s0] sm:$0xff]  ;;  %274 = vmatprep.subr.bf16.mxu1 %v307_v0  ;;  %290 = vmatprep.mubr.msk.bf16.mxu1 %vm308_vm0, %v307_v0  ;;  %v298_v6 = vld [vmem:[%s394_s4 + $0x30] sm:$0xff]   ;;  %v299_v7 = vld [vmem:[%s394_s4 + $0x28] sm:$0xff]   ;;  %v110_v40 = vshrl.u32 %v109_v39, 7 }
   0x3   :  { %269 = vmatpush3.bf16.msra.mxu0 %v296_v1  ;;  %v26_v4 = vpack.c.bf16 %v25_v3, %v24_v2  ;;  %275 = vmatpush3.bf16.msra.mxu1 %v297_v5  ;;  %v300_v8 = vld [vmem:[%s394_s4 + $0x20] sm:$0xff]   ;;  %v301_v9 = vld [vmem:[%s394_s4 + $0x18] sm:$0xff]   ;;  %v302_v10 = vld [vmem:[%s394_s4 + $0x10] sm:$0xff]  }
   0x4   :  { %276 = vmatprep.subr.bf16.mxu1 %v307_v0  ;;  %v303_v11 = vld [vmem:[%s394_s4 + $0x8] sm:$0xff]   ;;  %v304_v12 = vld [vmem:[%s394_s4] sm:$0xff]   ;;  %v111_v42 = vsub.s32 0, %v110_v40 }
   0x5   :  { %v101_v41 = vld [vmem:[%s395_s2] sm:$0x1] }
   0x6   :  { %271 = vmatmul.mubr.msk.bf16.vlgmr.msra.gmra.mxu0 %vm35_vm1, %v26_v4  ;;  %v105_v45 = vld [vmem:[%s396_s3] sm:$0x1] }
   0x7   :  { %277 = vmatpush3.bf16.msra.mxu1 %v298_v6  ;;  %v248_v57 = vld [vmem:[%s397_s5] ss:$0 sm:$0xff] }
   0x8   :  { %278 = vmatprep.subr.bf16.mxu1 %v307_v0 }
   0xb   :  { %279 = vmatpush3.bf16.msra.mxu1 %v299_v7 }
   0xc   :  { %280 = vmatprep.subr.bf16.mxu1 %v307_v0 }
   0xf   :  { %281 = vmatpush3.bf16.msra.mxu1 %v300_v8 }
  0x10   :  { %282 = vmatprep.subr.bf16.mxu1 %v307_v0 }
  0x13   :  { %283 = vmatpush3.bf16.msra.mxu1 %v301_v9 }
  0x14   :  { %284 = vmatprep.subr.bf16.mxu1 %v307_v0 }
  0x17   :  { %285 = vmatpush3.bf16.msra.mxu1 %v302_v10 }
  0x18   :  { %286 = vmatprep.subr.bf16.mxu1 %v307_v0 }
  0x1b   :  { %287 = vmatpush3.bf16.msra.mxu1 %v303_v11 }
  0x1c   :  { %288 = vmatprep.subr.bf16.mxu1 %v307_v0 }
  0x1f   :  { %289 = vmatpush3.bf16.msra.mxu1 %v304_v12 }
  0xc6   :  { %v73_v13 = vpop.f32.mrf.mxu0 }
  0xc7   :  { %v88_v16 = vmul.f32 %v73_v13, %v73_v13 }
  0xc8   :  { %v272_v14 = vpop.f32.mrf.mxu0 }
  0xca   :  { %v76_v15 = vpop.f32.mrf.mxu0 }
  0xcb   :  { %v80_v17 = vadd.f32 %v76_v15, %v73_v13  ;;  %v89_v18 = vmul.f32 %v76_v15, %v76_v15 }
  0xcc   :  { %v273_v19 = vpop.f32.mrf.mxu0 }
  0xcd   :  { %v81_v20 = vrot.slane %v80_v17, 4  ;;  %v90_v21 = vadd.f32 %v89_v18, %v88_v16 }
  0xcf   :  { %v82_v22 = vadd.f32 %v81_v20, %v80_v17  ;;  %v91_v23 = vrot.slane %v90_v21, 4 }
  0xd1   :  { %v83_v24 = vrot.slane %v82_v22, 2  ;;  %v92_v25 = vadd.f32 %v91_v23, %v90_v21 }
  0xd3   :  { %v84_v26 = vadd.f32 %v83_v24, %v82_v22  ;;  %v93_v27 = vrot.slane %v92_v25, 2 }
  0xd5   :  { %v85_v28 = vrot.slane %v84_v26, 1  ;;  %v94_v29 = vadd.f32 %v93_v27, %v92_v25 }
  0xd7   :  { %v86_v30 = vadd.f32 %v85_v28, %v84_v26  ;;  %v95_v31 = vrot.slane %v94_v29, 1 }
  0xd9   :  { %v87_v32 = vmul.f32 0.0625, %v86_v30  ;;  %v96_v33 = vadd.f32 %v95_v31, %v94_v29 }
  0xdb   :  { %v97_v34 = vmul.f32 0.0625, %v96_v33  ;;  %v98_v35 = vmul.f32 %v87_v32, %v87_v32 }
  0xdd   :  { %v99_v36 = vsub.f32 %v97_v34, %v98_v35 }
  0xdf   :  { %v100_v37 = vmax.f32 %v99_v36, 0.0 }
  0xe1   :  { %v102_v38 = vadd.f32 1e-05, %v100_v37 }
  0xe3   :  { %305 = vrsqrt.f32 %v102_v38 }
  0xf0   :  { %v306_v43 = vpop.eup %305 }
  0xf1   :  { %v104_v44 = vmul.f32 %v306_v43, %v101_v41 }
  0xf3   :  { %v106_v46 = vmul.f32 %v104_v44, %v87_v32  ;;  %v112_v47 = vrot.slane %v104_v44, %v111_v42 }
  0xf5   :  { %v107_v48 = vsub.f32 %v105_v45, %v106_v46  ;;  %v114_v49 = vmul.f32 %v112_v47, %v73_v13  ;;  %v115_v50 = vmul.f32 %v112_v47, %v76_v15 }
  0xf7   :  { %v120_v51 = vrot.slane %v107_v48, %v111_v42 }
  0xf9   :  { %v123_v52 = vadd.f32 %v120_v51, %v115_v50  ;;  %v122_v53 = vadd.f32 %v120_v51, %v114_v49 }
  0xfb   :  { %v124_v54 = vmax.f32 %v122_v53, 0.0  ;;  %v125_v55 = vmax.f32 %v123_v52, 0.0 }
  0xfd   :  { %v126_v56 = vpack.c.bf16 %v125_v55, %v124_v54 }
  0xff   :  { %291 = vmatmul.mubr.bf16.vlgmr.msra.gmra.mxu1 %v126_v56 }
 0x1bf   :  { %v232_v58 = vpop.f32.mrf.mxu1 }
 0x1c0   :  { %v233_v59 = vadd.f32 %v248_v57, %v232_v58 }
 0x1c1   :  { %v292_v60 = vpop.f32.mrf.mxu1 }
 0x1c2   :  { %240 = vst.msk [vmem:[%s398_s6] sm:$0xff] %vm239_vm2, %v233_v59 }
 0x1c3   :  { %v235_v61 = vpop.f32.mrf.mxu1 }
 0x1c4   :  { %v236_v62 = vadd.f32 %v248_v57, %v235_v61 }
 0x1c5   :  { %v293_v63 = vpop.f32.mrf.mxu1 }
 0x1c6   :  { %241 = vst.msk [vmem:[%s398_s6 + $0x8] sm:$0xff] %vm239_vm2, %v236_v62 }

</bundles_post_ra>
